<compile_context>
chip_gen: v6e
topology: v6e:2x2x1
jax: 0.10.0
libtpu: 0.0.40
codegen_flags: <defaults>
</compile_context>

<pallas_src>
import itertools

import jax
import jax.numpy as jnp
from jax.experimental import pallas as pl
from jax.experimental.pallas import tpu as pltpu


def _round_up(x, m):
    return ((x + m - 1) // m) * m


def _cdiv(a, b):
    return (a + b - 1) // b


# ----------------------------------------------------------------------------
# Module precompute (pure JAX "glue", mirrors ThinPlateSpline.__init__)
# ----------------------------------------------------------------------------
def _pairwise_tps_kernel(points_a, points_b):
    """K = 0.5 * r^2 * log(r^2), with NaN (r == 0) replaced by 0."""
    diff = points_a[:, None, :] - points_b[None, :, :]          # (na, nb, 2)
    d2 = jnp.sum(diff * diff, axis=2)                           # (na, nb)
    safe = jnp.where(d2 > 0.0, d2, 1.0)
    k = 0.5 * d2 * jnp.log(safe)
    return jnp.where(d2 > 0.0, k, 0.0)


def make_tps_buffers(control_points, grid_shape, elasticity=0.0):
    """Builds module buffers.

    Returns:
      L_inverse   : (N+3, N+3) -- reference path only.
      grid_K1xy_t : (N+3, P)   -- reference path only.
      M           : (N, P)     -- fused L_inverse[:N, :] @ grid_K1xy_t, the
                                  single matrix the Pallas kernel streams.
    """
    n = control_points.shape[0]
    L = jnp.zeros((n + 3, n + 3), jnp.float32)
    L = L.at[:-3, -3].set(1.0)
    L = L.at[-3, :-3].set(1.0)
    L = L.at[:-3, -2:].set(control_points)
    L = L.at[-2:, :-3].set(control_points.T)
    K = _pairwise_tps_kernel(control_points, control_points)
    L = L.at[:-3, :-3].set(K + elasticity * jnp.eye(n, dtype=jnp.float32))
    # torch.pinverse(L) equivalent, done once at init (not in the hot path).
    L_inverse = jnp.linalg.pinv(L)                               # (N+3, N+3)

    gh, gw = grid_shape
    grid_points = jnp.asarray(
        list(itertools.product(range(gh), range(gw))), dtype=jnp.float32
    )                                                            # (P, 2)
    n_grid = gh * gw
    K_grid = _pairwise_tps_kernel(grid_points, control_points)   # (P, N)
    grid_K1xy = jnp.concatenate(
        [K_grid, jnp.ones((n_grid, 1), jnp.float32), grid_points], axis=1
    )                                                            # (P, N+3)
    grid_K1xy_t = grid_K1xy.T                                    # (N+3, P)

    # Fused constant: the last 3 columns of z are zero, so only the first N
    # rows of L_inverse ever matter: heights @ M == (z @ L_inv) @ G.
    M = jnp.dot(L_inverse[:n, :], grid_K1xy_t,
                precision=jax.lax.Precision.HIGHEST)             # (N, P)
    return L_inverse, grid_K1xy_t, M


# ----------------------------------------------------------------------------
# Init-time tiling plan + prepared (cast, padded) streamed matrix
# ----------------------------------------------------------------------------
def plan_tps(n, p, *, batch_hint=8, stream_dtype=jnp.float32,
             out_dtype=jnp.float32, vmem_budget_bytes=24 * 1024 * 1024,
             min_num_tiles=1, pallas_min_cols=1024):
    """Computes the tile size / grid once at module-init time.

    min_num_tiles=2 is recommended on v7x so both TensorCores get work.
    vmem_budget_bytes should be lowered (~16-24 MiB) on v7x (64 MiB physical
    per TC) and may be raised on v5e/v6e (128 MiB physical).
    """
    stream_dtype = jnp.dtype(stream_dtype)
    out_dtype = jnp.dtype(out_dtype)
    n8 = _round_up(n, 8)
    b8 = _round_up(max(batch_hint, 1), 8)

    cols128 = max(1, _cdiv(p, 128))
    # VMEM cost of one extra 128-column block of tile (default double
    # buffering of the streamed M tile and of the output tile).
    per_block = (2 * n8 * 128 * stream_dtype.itemsize
                 + 2 * b8 * 128 * out_dtype.itemsize)
    resident = 2 * b8 * n8 * stream_dtype.itemsize  # heights block
    cap_cols = max(1, (vmem_budget_bytes - resident) // per_block)

    num_tiles = max(min_num_tiles, _cdiv(cols128, cap_cols))
    tile_cols = _cdiv(cols128, num_tiles)
    tile = tile_cols * 128
    p_pad = num_tiles * tile

    return {
        "n": n,
        "p": p,
        "p_pad": p_pad,
        "tile": tile,
        "num_tiles": num_tiles,
        "stream_dtype": stream_dtype,
        "out_dtype": out_dtype,
        # Deep buffering only pays off on the genuinely small-tile path.
        "use_buffered3": (num_tiles >= 3) and (tile <= 512),
        "use_pallas": p_pad >= pallas_min_cols,
        "vmem_limit_bytes": int(vmem_budget_bytes + (8 << 20)),
    }


def prepare_stream_matrix(M, plan):
    """Cast + pad M once at init so forward never rewrites it in HBM."""
    n, p = M.shape
    assert n == plan["n"] and p == plan["p"]
    m = M.astype(plan["stream_dtype"])
    if plan["p_pad"] != p:
        m = jnp.pad(m, ((0, 0), (0, plan["p_pad"] - p)))
    return m


# ----------------------------------------------------------------------------
# Pallas kernel: out_tile = heights @ M_tile  (one lane-dense tile per step)
# ----------------------------------------------------------------------------
def _tps_matmul_kernel(h_ref, m_ref, out_ref):
    # h_ref   : (B, N)    resident across all grid steps
    # m_ref   : (N, TILE) one lane-dense tile of the fused matrix
    # out_ref : (B, TILE)
    out_ref[...] = jnp.dot(
        h_ref[...], m_ref[...], preferred_element_type=jnp.float32
    ).astype(out_ref.dtype)


def tps_forward(control_point_heights, M_stream, plan, *, use_pallas=None,
                return_padded=False, core_parallel=False):
    """Pallas implementation of ThinPlateSpline.forward.

    control_point_heights : (B, N)
    M_stream              : (N, P_pad) from prepare_stream_matrix
    core_parallel=True    : use CORE_PARALLEL on the P axis (v7x, 2 TCs).
    """
    b, n = control_point_heights.shape
    assert n == plan["n"], "heights feature dim must match plan"
    p, p_pad, tile = plan["p"], plan["p_pad"], plan["tile"]
    assert M_stream.shape == (n, p_pad), "M_stream must be prepared with this plan"

    h = control_point_heights.astype(plan["stream_dtype"])
    if use_pallas is None:
        use_pallas = plan["use_pallas"]

    if not use_pallas:
        # Small-P dispatch: launch overhead would dominate; let XLA fuse it.
        out = jnp.dot(h, M_stream, preferred_element_type=jnp.float32
                      ).astype(plan["out_dtype"])
    else:
        m_spec_kwargs = {}
        if plan["use_buffered3"]:
            m_spec_kwargs["pipeline_mode"] = pl.Buffered(3)
        sem = pltpu.CORE_PARALLEL if core_parallel else "parallel"

        out = pl.pallas_call(
            _tps_matmul_kernel,
            out_shape=jax.ShapeDtypeStruct((b, p_pad), plan["out_dtype"]),
            grid_spec=pltpu.PrefetchScalarGridSpec(
                num_scalar_prefetch=0,
                grid=(plan["num_tiles"],),
                in_specs=[
                    pl.BlockSpec((b, n), lambda j: (0, 0)),                      # heights
                    pl.BlockSpec((n, tile), lambda j: (0, j), **m_spec_kwargs),  # M tile
                ],
                out_specs=pl.BlockSpec((b, tile), lambda j: (0, j)),
            ),
            compiler_params=pltpu.CompilerParams(
                dimension_semantics=(sem,),
                vmem_limit_bytes=plan["vmem_limit_bytes"],
            ),
        )(h, M_stream)

    if return_padded or p_pad == p:
        return out
    return out[:, :p]


# ----------------------------------------------------------------------------
# Pure-JAX reference: exactly the PyTorch forward (un-fused, with zero concat)
# ----------------------------------------------------------------------------
def tps_forward_ref(control_point_heights, L_inverse, grid_K1xy_t):
    b = control_point_heights.shape[0]
    z = jnp.concatenate(
        [control_point_heights.astype(jnp.float32), jnp.zeros((b, 3), jnp.float32)],
        axis=1,
    )
    return (z @ L_inverse) @ grid_K1xy_t


def _check(out, ref, tol, name):
    out32 = out.astype(jnp.float32)
    ref32 = ref.astype(jnp.float32)
    err = float(jnp.max(jnp.abs(out32 - ref32)))
    scale = float(jnp.max(jnp.abs(ref32))) + 1.0
    assert err / scale < tol, f"{name}: rel-to-max error {err / scale:.3e}"


if __name__ == "__main__":
    key = jax.random.PRNGKey(0)
    k_cp, k_h = jax.random.split(key)

    n_control = 16
    batch = 8

    control_points = jax.random.uniform(
        k_cp, (n_control, 2), jnp.float32, minval=0.0, maxval=63.0
    )
    heights = jax.random.normal(k_h, (batch, n_control), jnp.float32)

    # --- Case 1: 64x64 grid (P=4096) -> Pallas streaming path, single large
    #             lane-dense tile, no pad / no slice (P % 128 == 0).
    L_inv, G, M = make_tps_buffers(control_points, (64, 64))
    plan = plan_tps(n_control, M.shape[1], batch_hint=batch)
    M_stream = prepare_stream_matrix(M, plan)
    out = jax.block_until_ready(tps_forward(heights, M_stream, plan))
    ref = tps_forward_ref(heights, L_inv, G)
    assert out.shape == (batch, 64 * 64)
    _check(out, ref, 1e-3, "f32 large-tile")

    # --- Case 2: ragged 20x17 grid (P=340), tiny VMEM budget to force a
    #             3-step streaming grid (exercises padding + pl.Buffered(3)).
    L_inv2, G2, M2 = make_tps_buffers(control_points, (20, 17))
    plan2 = plan_tps(n_control, M2.shape[1], batch_hint=batch,
                     vmem_budget_bytes=32 * 1024)
    M2_stream = prepare_stream_matrix(M2, plan2)
    out2 = jax.block_until_ready(
        tps_forward(heights, M2_stream, plan2, use_pallas=True))
    ref2 = tps_forward_ref(heights, L_inv2, G2)
    assert out2.shape == (batch, 20 * 17)
    _check(out2, ref2, 1e-3, "padded multi-tile")

    # --- Case 3: bf16 streamed operand + bf16 output (memory-bound fast
    #             path); compare against a bf16 XLA reference (same
    #             quantization, f32 accumulation).
    plan3 = plan_tps(n_control, M.shape[1], batch_hint=batch,
                     stream_dtype=jnp.bfloat16, out_dtype=jnp.bfloat16)
    M3_stream = prepare_stream_matrix(M, plan3)
    out3 = jax.block_until_ready(
        tps_forward(heights, M3_stream, plan3, use_pallas=True))
    ref3 = jnp.dot(heights.astype(jnp.bfloat16), M.astype(jnp.bfloat16),
                   preferred_element_type=jnp.float32)
    _check(out3, ref3, 1e-2, "bf16 path")

    # --- Case 4: small 16x16 grid (P=256) -> auto-dispatch takes the plain
    #             XLA jnp.dot path (below the Pallas column threshold).
    L_inv4, G4, M4 = make_tps_buffers(control_points, (16, 16))
    plan4 = plan_tps(n_control, M4.shape[1], batch_hint=batch)
    assert not plan4["use_pallas"]
    M4_stream = prepare_stream_matrix(M4, plan4)
    out4 = jax.block_until_ready(tps_forward(heights, M4_stream, plan4))
    ref4 = tps_forward_ref(heights, L_inv4, G4)
    assert out4.shape == (batch, 16 * 16)
    _check(out4, ref4, 1e-3, "small-P XLA dispatch")

    print("KERNEL_OK")
</pallas_src>

<mosaic_0001>
module attributes {stable_mosaic.version = 11 : i64} {
  func.func @_tps_matmul_kernel(%arg0: i32, %arg1: memref<8x16xf32, #tpu.memory_space<vmem>>, %arg2: memref<16x4096xf32, #tpu.memory_space<vmem>>, %arg3: memref<8x4096xf32, #tpu.memory_space<vmem>>) attributes {dimension_semantics = [#tpu.dimension_semantics<parallel>], iteration_bounds = array<i64: 1>, scalar_prefetch = 0 : i64, scratch_operands = 0 : i64, tpu.core_type = #tpu.core_type<tc>, window_params = [{pipeline_mode = #tpu.pipeline_mode<synchronous>, transform_indices = @transform_0, window_bounds = array<i64: 8, 16>}, {transform_indices = @transform_1, window_bounds = array<i64: 16, 4096>}, {transform_indices = @transform_2, window_bounds = array<i64: 8, 4096>}]} {
    %c0 = arith.constant 0 : index
    %c0_0 = arith.constant 0 : index
    %0 = vector.load %arg1[%c0, %c0_0] : memref<8x16xf32, #tpu.memory_space<vmem>>, vector<8x16xf32>
    %c0_1 = arith.constant 0 : index
    %c0_2 = arith.constant 0 : index
    %1 = vector.load %arg2[%c0_1, %c0_2] : memref<16x4096xf32, #tpu.memory_space<vmem>>, vector<16x4096xf32>
    %cst = arith.constant dense<0.000000e+00> : vector<8x4096xf32>
    %2 = tpu.matmul %0, %1, %cst {dimension_numbers = #tpu.dot_dimension_numbers<[1], [0], [0], [1], [0, 0, 1, 1], [], []>} : vector<8x16xf32>, vector<16x4096xf32>, vector<8x4096xf32> -> vector<8x4096xf32>
    %c0_3 = arith.constant 0 : index
    %c0_4 = arith.constant 0 : index
    %3 = vector.load %arg3[%c0_3, %c0_4] : memref<8x4096xf32, #tpu.memory_space<vmem>>, vector<8x4096xf32>
    tpu.vector_store %arg3[%c0_3, %c0_4], %2 {strides = array<i32>} : memref<8x4096xf32, #tpu.memory_space<vmem>>, vector<8x4096xf32>,
    return
  }
  func.func @transform_0(%arg0: i32) -> (i32, i32) {
    %c0_i32 = arith.constant 0 : i32
    %c0_i32_0 = arith.constant 0 : i32
    %c0_i32_1 = arith.constant 0 : i32
    return %c0_i32, %c0_i32_0 : i32, i32
  }
  func.func @transform_1(%arg0: i32) -> (i32, i32) {
    %c0_i32 = arith.constant 0 : i32
    %c0_i32_0 = arith.constant 0 : i32
    return %c0_i32, %arg0 : i32, i32
  }
  func.func @transform_2(%arg0: i32) -> (i32, i32) {
    %c0_i32 = arith.constant 0 : i32
    %c0_i32_0 = arith.constant 0 : i32
    return %c0_i32, %arg0 : i32, i32
  }
}

</mosaic_0001>

<bundles_post_ra>
// kernel: tpu_custom_call.1
= control target key start
LH: loop header
LB: loop body
LE: loop exit
PB: predicated region body
PF: predicated region fallthrough
CT: control target
= control target key end

     0   :  { %7 = vsyncpa [#allocation3], 0  ;;  %s1459_s0 = inlined_call_operand.hbm [shape: f32[8,16], index: 0, kind: input, shape index: {}]   ;;  %s1460_s1 = inlined_call_operand.hbm [shape: f32[16,4096], index: 1, kind: input, shape index: {}]   ;;  %s1461_s2 = inlined_call_operand.hbm [shape: f32[8,4096], index: 2, kind: output, shape index: {}]  }
   0x1   :  { %8 = vsyncpa [#allocation6], 0 }
   0x2   :  { %9 = vsyncpa [#allocation4], 0  ;;  %s1379_s9 = smov [#allocation2]   ;;  %s1380_s11 = smov [#allocation5]  }
   0x3   :  { %s16_s10 = sshll.u32 %s1379_s9, 4  ;;  %s25_s12 = sshll.u32 %s1380_s11, 4  ;;  %s17_s10 = int_to_ptr.vmem [resolvable:$true] %s16_s10  ;;  %s26_s12 = int_to_ptr.vmem [resolvable:$true] %s25_s12 }
   0x4   :  { %s1321_s13 = scalar_lea.vmem %s17_s10, 128  ;;  %p1326_p1 = scmp.lt.s32.totalorder %s17_s10, %s17_s10 }
   0x5   :  { %p1322_p0 = scmp.ne.s32.totalorder %s17_s10, %s1321_s13  ;;  %p1327_p2 = scmp.lt.s32.totalorder %s1321_s13, %s1321_s13 }
   0x7   :  { %p1328_p3 = por %p1327_p2, %p1326_p1 }
   0x9   :  { %p1329_p4 = pnand %p1328_p3, %p1322_p0 }
   0xb   :  { %1332 = shalt.err (!%p1329_p4)
}
   0xc   :  { %19 = dma.hbm_to_vmem [thread:$0]  %s1459_s0, 128, %s17_s10, [#allocation3]  }
   0xd   :  { %s1341_s16 = scalar_lea.vmem %s26_s12, 8192  ;;  %p1346_p6 = scmp.lt.s32.totalorder %s26_s12, %s26_s12 }
   0xe   :  { %p1342_p5 = scmp.ne.s32.totalorder %s26_s12, %s1341_s16  ;;  %p1347_p7 = scmp.lt.s32.totalorder %s1341_s16, %s1341_s16 }
  0x10   :  { %p1348_p8 = por %p1347_p7, %p1346_p6 }
  0x12   :  { %p1349_p9 = pnand %p1348_p8, %p1342_p5 }
  0x14   :  { %1352 = shalt.err (!%p1349_p9)
}
  0x15   :  { %s1381_s17 = smov 4096   ;;  %s1382_s18 = smov 256  }
  0x16   :  { %31 = dma.hbm_to_vmem [thread:$0]  %s1460_s1, 8192, %s26_s12, [#allocation6], %s1381_s17, %s1381_s17, %s1382_s18  }
  0x17   :  { %1373 = dma.done.wait [#allocation3], 128  }
  0x18   :  { %1374 = vsyncadd [#allocation3], 4294967168 }
  0x19   :  { %1375 = dma.done.wait [#allocation6], 8192  }
  0x1a   :  { %1376 = vsyncadd [#allocation6], 4294959104  ;;  %v1383_v0 = vmov 0.0   ;;  %v72_v1 = vld [vmem:[#allocation5 + $0x108] sm:$0xff]  ;;  %v74_v2 = vld [vmem:[#allocation5 + $0x118] sm:$0xff]  ;;  %vm103_vm0 = vcmask 130048  }
  0x1b   :  { %171 = vmatprep.mubr.f32.mxu0 %v1383_v0  ;;  %242 = vmatprep.mubr.f32.mxu1 %v1383_v0  ;;  %v71_v3 = vld [vmem:[#allocation5 + $0x100] sm:$0xff]  ;;  %v73_v4 = vld [vmem:[#allocation5 + $0x110] sm:$0xff]  ;;  %v40_v5 = vld [vmem:[#allocation5 + $0x8] sm:$0xff]  ;;  %s1384_s0 = smov [#allocation7]  }
  0x1c   :  { %135 = vmatprep.subr.mxu0 %v72_v1  ;;  %206 = vmatprep.subr.mxu1 %v74_v2  ;;  %v42_v6 = vld [vmem:[#allocation5 + $0x18] sm:$0xff]  ;;  %v39_v7 = vld [vmem:[#allocation5] sm:$0xff]  ;;  %v41_v8 = vld [vmem:[#allocation5 + $0x10] sm:$0xff]  ;;  %s1281_s1 = sshll.u32 %s1384_s0, 4  ;;  %s1282_s1 = int_to_ptr.vmem [resolvable:$true] %s1281_s1 }
  0x1d   :  { %136 = vmatpush1.msra.mxu0 %v71_v3  ;;  %207 = vmatpush1.msra.mxu1 %v73_v4  ;;  %v1408_v9 = vld [vmem:[#allocation2] sm:$0xff]  ;;  %v76_v10 = vld [vmem:[#allocation5 + $0x128] sm:$0xff]  ;;  %v75_v12 = vld [vmem:[#allocation5 + $0x120] sm:$0xff]  ;;  %s1353_s21 = scalar_lea.vmem %s1282_s1, 4096  ;;  %p1358_p11 = scmp.lt.s32.totalorder %s1282_s1, %s1282_s1 }
  0x1e   :  { %137 = vmatprep.subr.mxu0 %v40_v5  ;;  %208 = vmatprep.subr.mxu1 %v42_v6  ;;  %v78_v11 = vld [vmem:[#allocation5 + $0x138] sm:$0xff]  ;;  %v77_v13 = vld [vmem:[#allocation5 + $0x130] sm:$0xff]  ;;  %v44_v14 = vld [vmem:[#allocation5 + $0x28] sm:$0xff]  ;;  %p1354_p10 = scmp.ne.s32.totalorder %s1282_s1, %s1353_s21  ;;  %p1359_p12 = scmp.lt.s32.totalorder %s1353_s21, %s1353_s21 }
  0x1f   :  { %138 = vmatpush1.msra.mxu0 %v39_v7  ;;  %209 = vmatpush1.msra.mxu1 %v41_v8  ;;  %v46_v15 = vld [vmem:[#allocation5 + $0x38] sm:$0xff]  ;;  %v43_v16 = vld [vmem:[#allocation5 + $0x20] sm:$0xff]  ;;  %v45_v17 = vld [vmem:[#allocation5 + $0x30] sm:$0xff] }
  0x20   :  { %1291 = vmatmul.mubr.msk.f32.vlgmr.msra.gmra.mxu0 %vm103_vm0, %v1408_v9  ;;  %1292 = vmatmul.mubr.msk.f32.vlgmr.msra.gmra.mxu1 %vm103_vm0, %v1408_v9  ;;  %v80_v18 = vld [vmem:[#allocation5 + $0x148] sm:$0xff]  ;;  %v82_v19 = vld [vmem:[#allocation5 + $0x158] sm:$0xff]  ;;  %v79_v20 = vld [vmem:[#allocation5 + $0x140] sm:$0xff]  ;;  %p1360_p13 = por %p1359_p12, %p1358_p11 }
  0x21   :  { %277 = vmatprep.subr.mxu0 %v76_v10  ;;  %348 = vmatprep.subr.mxu1 %v78_v11  ;;  %v81_v21 = vld [vmem:[#allocation5 + $0x150] sm:$0xff]  ;;  %v48_v22 = vld [vmem:[#allocation5 + $0x48] sm:$0xff]  ;;  %v50_v23 = vld [vmem:[#allocation5 + $0x58] sm:$0xff] }
  0x22   :  { %278 = vmatpush1.msra.mxu0 %v75_v12  ;;  %349 = vmatpush1.msra.mxu1 %v77_v13  ;;  %v47_v24 = vld [vmem:[#allocation5 + $0x40] sm:$0xff]  ;;  %v49_v25 = vld [vmem:[#allocation5 + $0x50] sm:$0xff]  ;;  %v84_v26 = vld [vmem:[#allocation5 + $0x168] sm:$0xff]  ;;  %p1361_p0 = pnand %p1360_p13, %p1354_p10 }
  0x23   :  { %279 = vmatprep.subr.mxu0 %v44_v14  ;;  %350 = vmatprep.subr.mxu1 %v46_v15  ;;  %v86_v27 = vld [vmem:[#allocation5 + $0x178] sm:$0xff]  ;;  %v83_v28 = vld [vmem:[#allocation5 + $0x160] sm:$0xff]  ;;  %v85_v29 = vld [vmem:[#allocation5 + $0x170] sm:$0xff] }
  0x24   :  { %280 = vmatpush1.msra.mxu0 %v43_v16  ;;  %313 = vmatprep.mubr.f32.mxu0 %v1383_v0  ;;  %v52_v30 = vld [vmem:[#allocation5 + $0x68] sm:$0xff]  ;;  %v54_v31 = vld [vmem:[#allocation5 + $0x78] sm:$0xff]  ;;  %v51_v32 = vld [vmem:[#allocation5 + $0x60] sm:$0xff] }
  0x25   :  { %351 = vmatpush1.msra.mxu1 %v45_v17  ;;  %384 = vmatprep.mubr.f32.mxu1 %v1383_v0  ;;  %v53_v33 = vld [vmem:[#allocation5 + $0x70] sm:$0xff]  ;;  %v88_v34 = vld [vmem:[#allocation5 + $0x188] sm:$0xff]  ;;  %v90_v35 = vld [vmem:[#allocation5 + $0x198] sm:$0xff] }
  0x26   :  { %1293 = vmatmul.mubr.msk.f32.vlgmr.msra.gmra.mxu0 %vm103_vm0, %v1408_v9  ;;  %1294 = vmatmul.mubr.msk.f32.vlgmr.msra.gmra.mxu1 %vm103_vm0, %v1408_v9  ;;  %v87_v36 = vld [vmem:[#allocation5 + $0x180] sm:$0xff]  ;;  %v89_v37 = vld [vmem:[#allocation5 + $0x190] sm:$0xff]  ;;  %v56_v38 = vld [vmem:[#allocation5 + $0x88] sm:$0xff] }
  0x27   :  { %419 = vmatprep.subr.mxu0 %v80_v18  ;;  %490 = vmatprep.subr.mxu1 %v82_v19  ;;  %v58_v39 = vld [vmem:[#allocation5 + $0x98] sm:$0xff]  ;;  %v55_v40 = vld [vmem:[#allocation5 + $0x80] sm:$0xff]  ;;  %v57_v41 = vld [vmem:[#allocation5 + $0x90] sm:$0xff] }
  0x28   :  { %420 = vmatpush1.msra.mxu0 %v79_v20  ;;  %491 = vmatpush1.msra.mxu1 %v81_v21  ;;  %v92_v42 = vld [vmem:[#allocation5 + $0x1a8] sm:$0xff]  ;;  %v94_v43 = vld [vmem:[#allocation5 + $0x1b8] sm:$0xff]  ;;  %v91_v44 = vld [vmem:[#allocation5 + $0x1a0] sm:$0xff] }
  0x29   :  { %421 = vmatprep.subr.mxu0 %v48_v22  ;;  %492 = vmatprep.subr.mxu1 %v50_v23  ;;  %v93_v45 = vld [vmem:[#allocation5 + $0x1b0] sm:$0xff]  ;;  %v60_v46 = vld [vmem:[#allocation5 + $0xa8] sm:$0xff]  ;;  %v62_v47 = vld [vmem:[#allocation5 + $0xb8] sm:$0xff] }
  0x2a   :  { %422 = vmatpush1.msra.mxu0 %v47_v24  ;;  %455 = vmatprep.mubr.f32.mxu0 %v1383_v0  ;;  %v59_v48 = vld [vmem:[#allocation5 + $0xa0] sm:$0xff]  ;;  %v61_v49 = vld [vmem:[#allocation5 + $0xb0] sm:$0xff]  ;;  %v96_v50 = vld [vmem:[#allocation5 + $0x1c8] sm:$0xff] }
  0x2b   :  { %493 = vmatpush1.msra.mxu1 %v49_v25  ;;  %526 = vmatprep.mubr.f32.mxu1 %v1383_v0  ;;  %v98_v51 = vld [vmem:[#allocation5 + $0x1d8] sm:$0xff]  ;;  %v95_v52 = vld [vmem:[#allocation5 + $0x1c0] sm:$0xff]  ;;  %v97_v53 = vld [vmem:[#allocation5 + $0x1d0] sm:$0xff] }
  0x2c   :  { %1295 = vmatmul.mubr.msk.f32.vlgmr.msra.gmra.mxu0 %vm103_vm0, %v1408_v9  ;;  %1296 = vmatmul.mubr.msk.f32.vlgmr.msra.gmra.mxu1 %vm103_vm0, %v1408_v9  ;;  %v64_v54 = vld [vmem:[#allocation5 + $0xc8] sm:$0xff]  ;;  %v66_v55 = vld [vmem:[#allocation5 + $0xd8] sm:$0xff]  ;;  %v63_v56 = vld [vmem:[#allocation5 + $0xc0] sm:$0xff] }
  0x2d   :  { %561 = vmatprep.subr.mxu0 %v84_v26  ;;  %632 = vmatprep.subr.mxu1 %v86_v27  ;;  %v65_v57 = vld [vmem:[#allocation5 + $0xd0] sm:$0xff]  ;;  %v100_v58 = vld [vmem:[#allocation5 + $0x1e8] sm:$0xff]  ;;  %v102_v59 = vld [vmem:[#allocation5 + $0x1f8] sm:$0xff] }
  0x2e   :  { %562 = vmatpush1.msra.mxu0 %v83_v28  ;;  %633 = vmatpush1.msra.mxu1 %v85_v29  ;;  %v99_v60 = vld [vmem:[#allocation5 + $0x1e0] sm:$0xff]  ;;  %v101_v61 = vld [vmem:[#allocation5 + $0x1f0] sm:$0xff]  ;;  %v68_v62 = vld [vmem:[#allocation5 + $0xe8] sm:$0xff] }
  0x2f   :  { %563 = vmatprep.subr.mxu0 %v52_v30  ;;  %634 = vmatprep.subr.mxu1 %v54_v31  ;;  %v70_v63 = vld [vmem:[#allocation5 + $0xf8] sm:$0xff]  ;;  %v67_v1 = vld [vmem:[#allocation5 + $0xe0] sm:$0xff]  ;;  %v69_v2 = vld [vmem:[#allocation5 + $0xf0] sm:$0xff] }
  0x30   :  { %564 = vmatpush1.msra.mxu0 %v51_v32  ;;  %597 = vmatprep.mubr.f32.mxu0 %v1383_v0 }
  0x31   :  { %635 = vmatpush1.msra.mxu1 %v53_v33  ;;  %668 = vmatprep.mubr.f32.mxu1 %v1383_v0 }
  0x32   :  { %1297 = vmatmul.mubr.msk.f32.vlgmr.msra.gmra.mxu0 %vm103_vm0, %v1408_v9  ;;  %1298 = vmatmul.mubr.msk.f32.vlgmr.msra.gmra.mxu1 %vm103_vm0, %v1408_v9 }
  0x33   :  { %703 = vmatprep.subr.mxu0 %v88_v34  ;;  %774 = vmatprep.subr.mxu1 %v90_v35 }
  0x34   :  { %704 = vmatpush1.msra.mxu0 %v87_v36  ;;  %775 = vmatpush1.msra.mxu1 %v89_v37 }
  0x35   :  { %705 = vmatprep.subr.mxu0 %v56_v38  ;;  %776 = vmatprep.subr.mxu1 %v58_v39 }
  0x36   :  { %706 = vmatpush1.msra.mxu0 %v55_v40  ;;  %739 = vmatprep.mubr.f32.mxu0 %v1383_v0 }
  0x37   :  { %777 = vmatpush1.msra.mxu1 %v57_v41  ;;  %810 = vmatprep.mubr.f32.mxu1 %v1383_v0 }
  0x38   :  { %1299 = vmatmul.mubr.msk.f32.vlgmr.msra.gmra.mxu0 %vm103_vm0, %v1408_v9  ;;  %1300 = vmatmul.mubr.msk.f32.vlgmr.msra.gmra.mxu1 %vm103_vm0, %v1408_v9 }
  0x39   :  { %845 = vmatprep.subr.mxu0 %v92_v42  ;;  %916 = vmatprep.subr.mxu1 %v94_v43 }
  0x3a   :  { %846 = vmatpush1.msra.mxu0 %v91_v44  ;;  %917 = vmatpush1.msra.mxu1 %v93_v45 }
  0x3b   :  { %847 = vmatprep.subr.mxu0 %v60_v46  ;;  %918 = vmatprep.subr.mxu1 %v62_v47 }
  0x3c   :  { %848 = vmatpush1.msra.mxu0 %v59_v48  ;;  %881 = vmatprep.mubr.f32.mxu0 %v1383_v0 }
  0x3d   :  { %919 = vmatpush1.msra.mxu1 %v61_v49  ;;  %952 = vmatprep.mubr.f32.mxu1 %v1383_v0 }
  0x3e   :  { %1301 = vmatmul.mubr.msk.f32.vlgmr.msra.gmra.mxu0 %vm103_vm0, %v1408_v9  ;;  %1302 = vmatmul.mubr.msk.f32.vlgmr.msra.gmra.mxu1 %vm103_vm0, %v1408_v9 }
  0x3f   :  { %987 = vmatprep.subr.mxu0 %v96_v50  ;;  %1058 = vmatprep.subr.mxu1 %v98_v51 }
  0x40   :  { %988 = vmatpush1.msra.mxu0 %v95_v52  ;;  %1059 = vmatpush1.msra.mxu1 %v97_v53 }
  0x41   :  { %989 = vmatprep.subr.mxu0 %v64_v54  ;;  %1060 = vmatprep.subr.mxu1 %v66_v55 }
  0x42   :  { %990 = vmatpush1.msra.mxu0 %v63_v56  ;;  %1023 = vmatprep.mubr.f32.mxu0 %v1383_v0 }
  0x43   :  { %1061 = vmatpush1.msra.mxu1 %v65_v57  ;;  %1094 = vmatprep.mubr.f32.mxu1 %v1383_v0 }
  0x44   :  { %1303 = vmatmul.mubr.msk.f32.vlgmr.msra.gmra.mxu0 %vm103_vm0, %v1408_v9  ;;  %1304 = vmatmul.mubr.msk.f32.vlgmr.msra.gmra.mxu1 %vm103_vm0, %v1408_v9 }
  0x45   :  { %1129 = vmatprep.subr.mxu0 %v100_v58  ;;  %1200 = vmatprep.subr.mxu1 %v102_v59 }
  0x46   :  { %1130 = vmatpush1.msra.mxu0 %v99_v60  ;;  %1201 = vmatpush1.msra.mxu1 %v101_v61 }
  0x47   :  { %1131 = vmatprep.subr.mxu0 %v68_v62  ;;  %1202 = vmatprep.subr.mxu1 %v70_v63 }
  0x48   :  { %1132 = vmatpush1.msra.mxu0 %v67_v1  ;;  %1165 = vmatprep.mubr.f32.mxu0 %v1383_v0 }
  0x49   :  { %1203 = vmatpush1.msra.mxu1 %v69_v2  ;;  %1236 = vmatprep.mubr.f32.mxu1 %v1383_v0 }
  0x4a   :  { %1305 = vmatmul.mubr.msk.f32.vlgmr.msra.gmra.mxu0 %vm103_vm0, %v1408_v9  ;;  %1306 = vmatmul.mubr.msk.f32.vlgmr.msra.gmra.mxu1 %vm103_vm0, %v1408_v9 }
  0xe0   :  { %v173_v3 = vpop.f32.mrf.mxu0  ;;  %v244_v4 = vpop.f32.mrf.mxu1 }
  0xe1   :  { %1243 = vst [vmem:[#allocation7] sm:$0xff] %v173_v3  ;;  %1245 = vst [vmem:[#allocation7 + $0x10] sm:$0xff] %v244_v4 }
  0xe2   :  { %v175_v5 = vpop.f32.mrf.mxu0  ;;  %v246_v6 = vpop.f32.mrf.mxu1 }
  0xe3   :  { %1244 = vst [vmem:[#allocation7 + $0x8] sm:$0xff] %v175_v5  ;;  %1246 = vst [vmem:[#allocation7 + $0x18] sm:$0xff] %v246_v6 }
  0xe6   :  { %v315_v7 = vpop.f32.mrf.mxu0  ;;  %v386_v8 = vpop.f32.mrf.mxu1 }
  0xe7   :  { %1247 = vst [vmem:[#allocation7 + $0x20] sm:$0xff] %v315_v7  ;;  %1249 = vst [vmem:[#allocation7 + $0x30] sm:$0xff] %v386_v8 }
  0xe8   :  { %v317_v10 = vpop.f32.mrf.mxu0  ;;  %v388_v0 = vpop.f32.mrf.mxu1 }
  0xe9   :  { %1248 = vst [vmem:[#allocation7 + $0x28] sm:$0xff] %v317_v10  ;;  %1250 = vst [vmem:[#allocation7 + $0x38] sm:$0xff] %v388_v0 }
  0xec   :  { %v457_v11 = vpop.f32.mrf.mxu0  ;;  %v528_v12 = vpop.f32.mrf.mxu1 }
  0xed   :  { %1251 = vst [vmem:[#allocation7 + $0x40] sm:$0xff] %v457_v11  ;;  %1253 = vst [vmem:[#allocation7 + $0x50] sm:$0xff] %v528_v12 }
  0xee   :  { %v459_v9 = vpop.f32.mrf.mxu0  ;;  %v530_v13 = vpop.f32.mrf.mxu1 }
  0xef   :  { %1252 = vst [vmem:[#allocation7 + $0x48] sm:$0xff] %v459_v9  ;;  %1254 = vst [vmem:[#allocation7 + $0x58] sm:$0xff] %v530_v13 }
  0xf2   :  { %v599_v14 = vpop.f32.mrf.mxu0  ;;  %v670_v15 = vpop.f32.mrf.mxu1 }
  0xf3   :  { %1255 = vst [vmem:[#allocation7 + $0x60] sm:$0xff] %v599_v14  ;;  %1257 = vst [vmem:[#allocation7 + $0x70] sm:$0xff] %v670_v15 }
  0xf4   :  { %v601_v16 = vpop.f32.mrf.mxu0  ;;  %v672_v17 = vpop.f32.mrf.mxu1 }
  0xf5   :  { %1256 = vst [vmem:[#allocation7 + $0x68] sm:$0xff] %v601_v16  ;;  %1258 = vst [vmem:[#allocation7 + $0x78] sm:$0xff] %v672_v17 }
  0xf8   :  { %v741_v18 = vpop.f32.mrf.mxu0  ;;  %v812_v19 = vpop.f32.mrf.mxu1 }
  0xf9   :  { %1259 = vst [vmem:[#allocation7 + $0x80] sm:$0xff] %v741_v18  ;;  %1261 = vst [vmem:[#allocation7 + $0x90] sm:$0xff] %v812_v19 }
  0xfa   :  { %v743_v20 = vpop.f32.mrf.mxu0  ;;  %v814_v21 = vpop.f32.mrf.mxu1 }
  0xfb   :  { %1260 = vst [vmem:[#allocation7 + $0x88] sm:$0xff] %v743_v20  ;;  %1262 = vst [vmem:[#allocation7 + $0x98] sm:$0xff] %v814_v21 }
  0xfe   :  { %v883_v22 = vpop.f32.mrf.mxu0  ;;  %v954_v23 = vpop.f32.mrf.mxu1 }
  0xff   :  { %1263 = vst [vmem:[#allocation7 + $0xa0] sm:$0xff] %v883_v22  ;;  %1265 = vst [vmem:[#allocation7 + $0xb0] sm:$0xff] %v954_v23 }
 0x100   :  { %v885_v24 = vpop.f32.mrf.mxu0  ;;  %v956_v25 = vpop.f32.mrf.mxu1 }
 0x101   :  { %1264 = vst [vmem:[#allocation7 + $0xa8] sm:$0xff] %v885_v24  ;;  %1266 = vst [vmem:[#allocation7 + $0xb8] sm:$0xff] %v956_v25 }
 0x104   :  { %v1025_v26 = vpop.f32.mrf.mxu0  ;;  %v1096_v27 = vpop.f32.mrf.mxu1 }
 0x105   :  { %1267 = vst [vmem:[#allocation7 + $0xc0] sm:$0xff] %v1025_v26  ;;  %1269 = vst [vmem:[#allocation7 + $0xd0] sm:$0xff] %v1096_v27 }
 0x106   :  { %v1027_v28 = vpop.f32.mrf.mxu0  ;;  %v1098_v29 = vpop.f32.mrf.mxu1 }
 0x107   :  { %1268 = vst [vmem:[#allocation7 + $0xc8] sm:$0xff] %v1027_v28  ;;  %1270 = vst [vmem:[#allocation7 + $0xd8] sm:$0xff] %v1098_v29 }
 0x10a   :  { %v1167_v30 = vpop.f32.mrf.mxu0  ;;  %v1238_v31 = vpop.f32.mrf.mxu1 }
 0x10b   :  { %1271 = vst [vmem:[#allocation7 + $0xe0] sm:$0xff] %v1167_v30  ;;  %1273 = vst [vmem:[#allocation7 + $0xf0] sm:$0xff] %v1238_v31 }
 0x10c   :  { %v1169_v32 = vpop.f32.mrf.mxu0  ;;  %v1240_v33 = vpop.f32.mrf.mxu1 }
 0x10d   :  { %1272 = vst [vmem:[#allocation7 + $0xe8] sm:$0xff] %v1169_v32  ;;  %1274 = vst [vmem:[#allocation7 + $0xf8] sm:$0xff] %v1240_v33 }
 0x10e   :  { %1364 = shalt.err (!%p1361_p0)
}
 0x10f   :  { %1284 = dma.vmem_to_hbm [thread:$0]  %s1282_s1, 4096, %s1461_s2, [#allocation4]  }
 0x110   :  { %1377 = dma.done.wait [#allocation4], 4096  }
 0x111   :  { %1378 = vsyncadd [#allocation4], 4294963200 }
 0x112   :  { %1288 = vsyncpa [#allocation3], 1 }
 0x113   :  { %1289 = vsyncpa [#allocation6], 1 }
 0x114   :  { %1290 = vsyncpa [#allocation4], 1 }

</bundles_post_ra>
